<compile_context>
chip_gen: v7x
topology: tpu7x:2x2x1
jax: 0.10.0
libtpu: 0.0.40
codegen_flags: <defaults>
</compile_context>

<pallas_src>
import math

import jax
import jax.numpy as jnp
from jax.experimental import pallas as pl
from jax.experimental.pallas import tpu as pltpu


def _round_up(x, m):
    return ((x + m - 1) // m) * m


def _token_embed_kernel(ids_ref, table3_ref, out_ref):
    # ids_ref:    VMEM (TB, 1)  int32     token ids for this tile
    # table3_ref: VMEM (3V, D)  bfloat16  exact 3-way bf16 split of the f32
    #                                     table: rows [0,V)=hi, [V,2V)=mid,
    #                                     [2V,3V)=lo  (hi+mid+lo == f32 table)
    # out_ref:    VMEM (TB, D)  out dtype
    tb, d = out_ref.shape
    v3 = table3_ref.shape[0]
    v = v3 // 3
    scale = jnp.float32(math.sqrt(d))

    ids = ids_ref[...]                                              # (TB, 1)
    vocab_iota = jax.lax.broadcasted_iota(jnp.int32, (tb, v), 1)    # (TB, V)
    one_hot = (vocab_iota == ids).astype(jnp.bfloat16)              # (TB, V)
    # Replicate the one-hot 3x along K so a single bf16 MXU pass (K = 3V)
    # gathers hi+mid+lo and sums them in the f32 accumulator -> f32-accurate
    # row reconstruction with 1 matmul (vs 6 passes for f32 HIGHEST).
    one_hot3 = jnp.tile(one_hot, (1, 3))                            # (TB, 3V)

    rows = jnp.dot(one_hot3, table3_ref[...],
                   preferred_element_type=jnp.float32)              # (TB, D)

    # Single whole-tile scale -> one unmasked lane-dense store.
    out_ref[...] = (rows * scale).astype(out_ref.dtype)


def _split_table_bf16x3(table_f32):
    """Exact 3-way bf16 decomposition; hi+mid+lo reconstructs f32 to ~1e-7 rel."""
    t_hi = table_f32.astype(jnp.bfloat16)
    r1 = table_f32 - t_hi.astype(jnp.float32)
    t_mid = r1.astype(jnp.bfloat16)
    r2 = r1 - t_mid.astype(jnp.float32)
    t_lo = r2.astype(jnp.bfloat16)
    return jnp.concatenate([t_hi, t_mid, t_lo], axis=0)             # (3V, D)


def token_embeddings_forward(x, table, *, token_block=2048, out_dtype=None):
    """x: (B, S) integer token ids; table: (V, D) float32.

    Returns table[x] * sqrt(D) with shape (B, S, D) in `out_dtype`
    (default: table.dtype; pass jnp.bfloat16 to halve the dominant HBM store
    traffic when downstream layers accept bf16 activations).
    """
    assert token_block % 8 == 0, "token_block must be a multiple of 8"
    B, S = x.shape
    V, D = table.shape
    n_tokens = B * S
    out_dtype = table.dtype if out_dtype is None else out_dtype

    # Token tile: big enough to amortize per-grid-step pipeline overhead, but
    # split into >=2 grid steps whenever possible so both v7x TensorCores get
    # work on the "parallel" token axis (no-op cost on single-TC v5e/v6e).
    half = -(-n_tokens // 2)
    tb = max(8, min(token_block, _round_up(half, 8)))

    ids = x.reshape(n_tokens).astype(jnp.int32)
    n_rows = n_tokens
    if n_tokens < tb:
        # Tiny input: a single 8-aligned block; pad ids, crop the few rows after.
        tb = _round_up(n_tokens, 8)
        if tb != n_tokens:
            ids = jnp.pad(ids, (0, tb - n_tokens))
            n_rows = tb
    ids_2d = ids.reshape(n_rows, 1)

    # Ragged last block is masked by Pallas -> no padded output array and no
    # post-slice HBM->HBM copy of the whole result.
    grid = pl.cdiv(n_rows, tb)

    # One-time weight transform (cache outside the step function in a real
    # model): exact 3-way bf16 split stacked along K.
    table3 = _split_table_bf16x3(table.astype(jnp.float32))

    # Scoped-VMEM budget from actual need with 2x headroom; never request the
    # full physical VMEM (v7x has only 64 MiB per TensorCore).
    f32, bf16, i32 = 4, 2, 4
    needed = (2 * tb * 1 * i32            # ids blocks (double-buffered)
              + 2 * 3 * V * D * bf16      # stacked table (double-buffered)
              + 2 * tb * D * f32          # output blocks (double-buffered)
              + tb * 3 * V * (i32 + bf16) # iota + one-hot temporaries
              + 2 * tb * D * f32)         # matmul result + scaled copy
    try:
        vmem_cap = pltpu.get_tpu_info().vmem_capacity_bytes
    except Exception:
        vmem_cap = 64 * 1024 * 1024       # conservative (v7x per-core VMEM)
    vmem_limit = int(min(max(2 * needed, 8 * 1024 * 1024),
                         48 * 1024 * 1024, (3 * vmem_cap) // 4))

    out_rows = pl.pallas_call(
        _token_embed_kernel,
        out_shape=jax.ShapeDtypeStruct((n_rows, D), out_dtype),
        grid_spec=pltpu.PrefetchScalarGridSpec(
            num_scalar_prefetch=0,
            grid=(grid,),
            in_specs=[
                # token-id tile as a small VMEM int32 block (TB, 1)
                pl.BlockSpec((tb, 1), lambda i: (i, 0)),
                # stacked bf16 table resident in VMEM; constant index_map so
                # the pipeline fetches it once and re-uses the same block.
                pl.BlockSpec((3 * V, D), lambda i: (0, 0)),
            ],
            out_specs=pl.BlockSpec((tb, D), lambda i: (i, 0)),
        ),
        compiler_params=pltpu.CompilerParams(
            dimension_semantics=("parallel",),
            vmem_limit_bytes=vmem_limit),
    )(ids_2d, table3)

    if n_rows != n_tokens:
        out_rows = out_rows[:n_tokens]
    return out_rows.reshape(B, S, D)


def make_embedding_table(key, vocab_size, embedding_dim, padding_idx=0):
    """Deterministic Xavier-uniform init, padding row zeroed (matches __init__)."""
    bound = math.sqrt(6.0 / (vocab_size + embedding_dim))
    w = jax.random.uniform(key, (vocab_size, embedding_dim),
                           dtype=jnp.float32, minval=-bound, maxval=bound)
    if padding_idx is not None:
        w = w.at[padding_idx].set(0.0)
    return w


if __name__ == "__main__":
    key = jax.random.PRNGKey(0)
    k_w, k_x, k_x2 = jax.random.split(key, 3)

    vocab_size, embedding_dim, padding_idx = 64, 128, 0
    table = make_embedding_table(k_w, vocab_size, embedding_dim, padding_idx)

    # Case 1: module-sized input (batch=2, seq=8); exercises the zeroed
    # padding row and the >=2-grid-step split (two 8-row blocks).
    B, S = 2, 8
    x = jax.random.randint(k_x, (B, S), 0, vocab_size, dtype=jnp.int32)
    x = x.at[0, 0].set(padding_idx)

    out = jax.block_until_ready(token_embeddings_forward(x, table))
    ref = (jnp.take(table, x.reshape(-1), axis=0).reshape(B, S, embedding_dim)
           * math.sqrt(embedding_dim))
    assert out.shape == (B, S, embedding_dim)
    assert out.dtype == table.dtype
    assert jnp.allclose(out, ref, atol=1e-5, rtol=1e-5), "mismatch vs reference"
    assert jnp.all(out[0, 0] == 0.0), "padding row must stay zero"

    # Case 2: ragged token count (148 tokens, 64-row blocks -> 3 grid steps,
    # masked last block, no padded-output copy).
    B2, S2 = 4, 37
    x2 = jax.random.randint(k_x2, (B2, S2), 0, vocab_size, dtype=jnp.int32)
    out2 = jax.block_until_ready(
        token_embeddings_forward(x2, table, token_block=64))
    ref2 = (jnp.take(table, x2.reshape(-1), axis=0).reshape(B2, S2, embedding_dim)
            * math.sqrt(embedding_dim))
    assert jnp.allclose(out2, ref2, atol=1e-5, rtol=1e-5), "mismatch (ragged case)"

    # Case 3: optional bf16 activations (halves the dominant HBM store traffic).
    out3 = jax.block_until_ready(
        token_embeddings_forward(x, table, out_dtype=jnp.bfloat16))
    assert out3.dtype == jnp.bfloat16
    assert jnp.allclose(out3.astype(jnp.float32), ref, atol=2e-2, rtol=2e-2)

    print("KERNEL_OK")
</pallas_src>

<mosaic_0001>
module attributes {stable_mosaic.version = 11 : i64} {
  func.func @_token_embed_kernel(%arg0: i32, %arg1: memref<8x1xi32, #tpu.memory_space<vmem>>, %arg2: memref<192x128xbf16, #tpu.memory_space<vmem>>, %arg3: memref<8x128xf32, #tpu.memory_space<vmem>>) attributes {dimension_semantics = [#tpu.dimension_semantics<parallel>], iteration_bounds = array<i64: 2>, scalar_prefetch = 0 : i64, scratch_operands = 0 : i64, tpu.core_type = #tpu.core_type<tc>, window_params = [{transform_indices = @transform_0, window_bounds = array<i64: 8, 1>}, {pipeline_mode = #tpu.pipeline_mode<synchronous>, transform_indices = @transform_1, window_bounds = array<i64: 192, 128>}, {transform_indices = @transform_2, window_bounds = array<i64: 8, 128>}]} {
    %c0 = arith.constant 0 : index
    %c0_0 = arith.constant 0 : index
    %0 = vector.load %arg1[%c0, %c0_0] : memref<8x1xi32, #tpu.memory_space<vmem>>, vector<8x1xi32>
    %1 = tpu.iota {dimensions = array<i32: 1>} : vector<8x64xi32>
    %2 = vector.broadcast %0 : vector<8x1xi32> to vector<8x64xi32>
    %3 = arith.cmpi eq, %1, %2 : vector<8x64xi32>
    %4 = arith.extui %3 : vector<8x64xi1> to vector<8x64xi32>
    %5 = arith.sitofp %4 : vector<8x64xi32> to vector<8x64xf32>
    %6 = arith.truncf %5 : vector<8x64xf32> to vector<8x64xbf16>
    %7 = tpu.concatenate %6, %6, %6 in 1 : vector<8x64xbf16>, vector<8x64xbf16>, vector<8x64xbf16> -> vector<8x192xbf16>
    %c0_1 = arith.constant 0 : index
    %c0_2 = arith.constant 0 : index
    %8 = vector.load %arg2[%c0_1, %c0_2] : memref<192x128xbf16, #tpu.memory_space<vmem>>, vector<192x128xbf16>
    %cst = arith.constant dense<0.000000e+00> : vector<8x128xf32>
    %9 = tpu.matmul %7, %8, %cst {dimension_numbers = #tpu.dot_dimension_numbers<[1], [0], [0], [1], [0, 0, 1, 1], [], []>} : vector<8x192xbf16>, vector<192x128xbf16>, vector<8x128xf32> -> vector<8x128xf32>
    %cst_3 = arith.constant 11.3137083 : f32
    %10 = vector.broadcast %cst_3 : f32 to vector<8x128xf32>
    %11 = arith.mulf %9, %10 : vector<8x128xf32>
    %c0_4 = arith.constant 0 : index
    %c0_5 = arith.constant 0 : index
    %12 = vector.load %arg3[%c0_4, %c0_5] : memref<8x128xf32, #tpu.memory_space<vmem>>, vector<8x128xf32>
    tpu.vector_store %arg3[%c0_4, %c0_5], %11 {strides = array<i32>} : memref<8x128xf32, #tpu.memory_space<vmem>>, vector<8x128xf32>,
    return
  }
  func.func @transform_0(%arg0: i32) -> (i32, i32) {
    %c0_i32 = arith.constant 0 : i32
    %c0_i32_0 = arith.constant 0 : i32
    return %arg0, %c0_i32 : i32, i32
  }
  func.func @transform_1(%arg0: i32) -> (i32, i32) {
    %c0_i32 = arith.constant 0 : i32
    %c0_i32_0 = arith.constant 0 : i32
    %c0_i32_1 = arith.constant 0 : i32
    return %c0_i32, %c0_i32_0 : i32, i32
  }
  func.func @transform_2(%arg0: i32) -> (i32, i32) {
    %c0_i32 = arith.constant 0 : i32
    %c0_i32_0 = arith.constant 0 : i32
    return %arg0, %c0_i32 : i32, i32
  }
}

</mosaic_0001>

<bundles_post_ra>
// kernel: tpu_custom_call.1
= control target key start
LH: loop header
LB: loop body
LE: loop exit
PB: predicated region body
PF: predicated region fallthrough
CT: control target
= control target key end

     0   :  { %7 = vsyncpa [#allocation3], 0  ;;  %s745_s0 = inlined_call_operand.vmem [shape: s32[16,1], index: 0, kind: input, shape index: {}]   ;;  %s746_s1 = inlined_call_operand.hbm [shape: bf16[192,128], index: 1, kind: input, shape index: {}]   ;;  %s747_s2 = inlined_call_operand.hbm [shape: f32[16,128], index: 2, kind: output, shape index: {}]  }
   0x1   :  { %8 = vsyncpa [#allocation4], 0 }
   0x2   :  { %10 = vsyncpa [#allocation4 + $0x1], 0  ;;  %s610_s9 = smov 0   ;;  %s612_s10 = smov 0  }
   0x3   :  { %s614_s11 = smov 0   ;;  %s616_s12 = smov 0  }
   0x4 LB: > { %s631_s13 = sadd.s32 4294967295, %s586_s12   ;;  %s398_s14 = sadd.s32 4294967294, %s586_s12   ;;  %s586_s12 = sphi %s616_s12, %s763_s12   ;;  %s582_s11 = sphi %s614_s11, %s762_s11   ;;  %s578_s10 = sphi %s612_s10, %s761_s10   ;;  %s574_s9 = sphi %s610_s9, %s760_s9  }
   0x5   : > { %s635_s15 = sadd.s32 1, %s586_s12   ;;  %s70_s16 = sadd.s32 1, %s582_s11 }
   0x6   : > { %s67_s17 = ssub.s32 %s586_s12, %s635_s15  ;;  %p80_p0 = scmp.ne.s32.totalorder %s582_s11, %s578_s10 }
   0x7   : > { %p68_p1 = scmp.eq.s32.totalorder %s67_s17, 0  ;;  %p81_p2 = scmp.eq.s32.totalorder %s631_s13, 1 }
   0x8   : > { %p86_p3 = scmp.ne.s32.totalorder %s578_s10, %s574_s9  ;;  %p87_p4 = scmp.eq.s32.totalorder %s398_s14, 1 }
   0x9   : > { %s646_s18 = scalar_select %p68_p1, %s582_s11, %s70_s16  }
   0xa   : > { %p648_p5 = por %p81_p2, %p80_p0  ;;  %p652_p6 = por %p87_p4, %p86_p3 }
   0xb   : > { %p399_p7 = scmp.ge.s32.totalorder %s586_s12, 1  ;;  %p94_p8 = scmp.lt.s32.totalorder %s586_s12, 3 }
   0xc   : > { %s751_s19 = scalar_select %p648_p5, 1, 0 }
   0xd   : > { %s752_s20 = scalar_select %p652_p6, 1, 0 }
   0xe   : > { %p748_p9 = scmp.eq.s32.totalorder %s631_s13, 0  ;;  %p659_p10 = pnand %p399_p7, %p94_p8 }
   0xf   : > { %s588_s22 = smov [#allocation2]   ;;  %s492_s27 = scalar_lea.hbm %s746_s1, 1536 }
  0x10   : > { %s753_s21 = scalar_select %p659_p10, 1, 0 }
  0x11   : > { %s106_s23 = sshll.u32 %s588_s22, 4  ;;  %p430_p11 = pneg %p659_p10  ;;  %s107_s23 = int_to_ptr.vmem [resolvable:$true] %s106_s23 }
  0x12   : > { %p493_p13 = scmp.ne.s32.totalorder %s746_s1, %s492_s27  ;;  %p499_p3 = scmp.lt.u32.totalorder %s492_s27, %s746_s1 }
  0x13   : > { %p667_p12 = pnand %p748_p9, %p430_p11 }
  0x15   : > { %p494_p0 = pneg %p667_p12 }
  0x17   : > { %p495_p1 = pnand %p494_p0, %p493_p13 }
  0x19   : > { %p496_p2 = pneg %p495_p1 }
  0x1b   : > { %p501_p4 = pnand %p499_p3, %p496_p2 }
  0x1d   : > { %504 = shalt.err (!%p501_p4)
}
  0x1e   : > { %s505_s4 = scalar_lea.vmem %s107_s23, 1536  ;;  %p513_p9 = scmp.lt.s32.totalorder %s107_s23, %s107_s23 }
  0x1f   : > { %p506_p7 = scmp.ne.s32.totalorder %s107_s23, %s505_s4  ;;  %p514_p6 = scmp.lt.s32.totalorder %s505_s4, %s505_s4 }
  0x21   : > { %p508_p8 = pnand %p506_p7, %p494_p0  ;;  %p515_p5 = por %p514_p6, %p513_p9 }
  0x23   : > { %p509_p11 = pneg %p508_p8 }
  0x25   : > { %p516_p10 = pnand %p515_p5, %p509_p11 }
  0x27   : > { %519 = shalt.err (!%p516_p10)
}
  0x28   : > { %s589_s5 = smov 64   ;;  %s590_s6 = smov 4  }
  0x29   : > { %433 = dma.hbm_to_vmem [thread:$0]  (!%p667_p12), %s746_s1, 1536, %s107_s23, [#allocation3], %s589_s5, %s589_s5, %s590_s6  }
  0x2a   : > { %p755_p13 = scmp.ne.s32.totalorder %s753_s21, 0 }
  0x2b   : > { %p756_p1 = scmp.eq.s32.totalorder (!%p755_p13), %s631_s13, 0 }
  0x2c   : > { %129 = sbr.rel (%p755_p13) target bundleno = 535 (0x217), region = 28 }
  0x33   : > { %565 = dma.done.wait (%p756_p1), [#allocation3], 1536   ;;  %p757_p0 = pmov %p756_p1 }
  0x34   : > { %p150_p5 = scmp.lt.s32.totalorder %s631_s13, 1  ;;  %v591_v0 = vmov 0   ;;  %v480_v2 = vld [vmem:[#allocation2] sm:$0xff]   ;;  %v481_v3 = vld [vmem:[#allocation2 + $0x8] sm:$0xff]   ;;  %v482_v4 = vld [vmem:[#allocation2 + $0x10] sm:$0xff]   ;;  %v156_v14 = vlaneseq  ;;  %v592_v17 = vmov 0.0  }
  0x35   : > { %567 = vsyncadd (%p757_p0), [#allocation3], 4294965760  ;;  %479 = vset.pattern.permute.xlu0 %v591_v0  ;;  %271 = vmatprep.subr.bf16.mxu0 %v591_v0  ;;  %v483_v5 = vld [vmem:[#allocation2 + $0x18] sm:$0xff]   ;;  %v484_v6 = vld [vmem:[#allocation2 + $0x20] sm:$0xff]   ;;  %vm168_vm1 = vcmask 523264   ;;  %s593_s21 = smov 64  }
  0x36   : > { %s151_s14 = scalar_select %p150_p5, %s631_s13, 1  ;;  %272 = vmatpush1.bf16.msra.mxu0 %v480_v2  ;;  %v485_v7 = vld [vmem:[#allocation2 + $0x28] sm:$0xff]   ;;  %v486_v8 = vld [vmem:[#allocation2 + $0x30] sm:$0xff]   ;;  %v487_v9 = vld [vmem:[#allocation2 + $0x38] sm:$0xff]   ;;  %v157_v15 = vand.u32 127, %v156_v14 }
  0x37   : > { %273 = vmatprep.subr.bf16.mxu0 %v591_v0  ;;  %v488_v10 = vld [vmem:[#allocation2 + $0x40] sm:$0xff]   ;;  %v489_v11 = vld [vmem:[#allocation2 + $0x48] sm:$0xff]   ;;  %v490_v12 = vld [vmem:[#allocation2 + $0x50] sm:$0xff]   ;;  %s147_s24 = sand.u32 1, %s578_s10   ;;  %s421_s26 = sshll.u32 %s631_s13, 7 }
  0x38   : > { %s405_s16 = sshll.u32 %s151_s14, 3  ;;  %v491_v13 = vld [vmem:[#allocation2 + $0x58] sm:$0xff]   ;;  %s404_s25 = sshll.u32 %s147_s24, 3 }
  0x39   : > { %s153_s23 = scalar_lea.vmem %s745_s0, %s405_s16  ;;  %s149_s27 = scalar_lea.vmem [#allocation5], %s404_s25 }
  0x3a   : > { %v155_v1 = vld [vmem:[%s153_s23] sm:$0xff]  ;;  %274 = vmatpush1.bf16.msra.mxu0 %v481_v3  ;;  %s327_s28 = sshll.u32 %s149_s27, 4  ;;  %s703_s3 = scalar_lea.hbm %s747_s2, %s421_s26  ;;  %s705_s28 = int_to_ptr.vmem [resolvable:$true] %s327_s28 }
  0x3b   : > { %159 = vperm.xlu0 %479, %v155_v1   ;;  %275 = vmatprep.subr.bf16.mxu0 %v591_v0  ;;  %s314_s4 = scalar_lea.sflag [#allocation4], %s147_s24  ;;  %s520_s13 = scalar_lea.vmem %s705_s28, 128 }
  0x3c   : > { %p521_p6 = scmp.ne.s32.totalorder %s705_s28, %s520_s13  ;;  %p758_p9 = scmp.ne.s32.totalorder %s751_s19, 0 }
  0x3d   : > { %s594_s5 = smov [#allocation5]  }
  0x3e   : > { %276 = vmatpush1.bf16.msra.mxu0 %v482_v4  ;;  %p522_p10 = pnand %p521_p6, %p758_p9  ;;  %s524_s6 = sshll.u32 %s594_s5, 4  ;;  %s525_s6 = int_to_ptr.vmem [resolvable:$false] %s524_s6 }
  0x3f   : > { %277 = vmatprep.subr.bf16.mxu0 %v591_v0  ;;  %s526_s7 = scalar_lea.vmem %s525_s6, 256  ;;  %p527_p2 = scmp.lt.s32.totalorder %s705_s28, %s525_s6 }
  0x40   : > { %p523_p12 = pneg %p522_p10  ;;  %p528_p3 = scmp.lt.s32.totalorder %s526_s7, %s520_s13 }
  0x42   : > { %278 = vmatpush1.bf16.msra.mxu0 %v483_v5  ;;  %p529_p4 = por %p528_p3, %p527_p2 }
  0x43   : > { %279 = vmatprep.subr.bf16.mxu0 %v591_v0 }
  0x44   : > { %p530_p7 = pnand %p529_p4, %p523_p12 }
  0x46   : > { %280 = vmatpush1.bf16.msra.mxu0 %v484_v6 }
  0x47   : > { %281 = vmatprep.subr.bf16.mxu0 %v591_v0 }
  0x4a   : > { %282 = vmatpush1.bf16.msra.mxu0 %v485_v7 }
  0x4b   : > { %283 = vmatprep.subr.bf16.mxu0 %v591_v0 }
  0x4e   : > { %284 = vmatpush1.bf16.msra.mxu0 %v486_v8 }
  0x4f   : > { %285 = vmatprep.subr.bf16.mxu0 %v591_v0 }
  0x52   : > { %286 = vmatpush1.bf16.msra.mxu0 %v487_v9 }
  0x53   : > { %287 = vmatprep.subr.bf16.mxu0 %v591_v0 }
  0x56   : > { %288 = vmatpush1.bf16.msra.mxu0 %v488_v10 }
  0x57   : > { %289 = vmatprep.subr.bf16.mxu0 %v591_v0 }
  0x5a   : > { %290 = vmatpush1.bf16.msra.mxu0 %v489_v11 }
  0x5b   : > { %291 = vmatprep.subr.bf16.mxu0 %v591_v0 }
  0x5e   : > { %292 = vmatpush1.bf16.msra.mxu0 %v490_v12 }
  0x5f   : > { %293 = vmatprep.subr.bf16.mxu0 %v591_v0 }
  0x62   : > { %294 = vmatpush1.bf16.msra.mxu0 %v491_v13 }
  0xba   : > { %v160_v16 = vpop.permute.xlu0 %159 }
  0xbb   : > { %vm161_vm0 = vcmp.eq.s32.totalorder %v157_v15, %v160_v16 }
  0xbc   : > { %v406_v18 = vsel %vm161_vm0, 1.0, %v592_v17 }
  0xbd   : > { %v164_v19 = vpack.c.bf16 %v406_v18, %v406_v18 }
  0xbf   : > { %166 = vrot.lane.b32.xlu0 %v164_v19, %s593_s21  ;;  %419 = vmatprep.mubr.msk.bf16.mxu0 %vm168_vm1, %v164_v19 }
 0x131   : > { %v167_v20 = vpop.permute.xlu0 %166 }
 0x132   : > { %v171_v21 = vsel %vm168_vm1, %v164_v19, %v167_v20 }
 0x133   : > { %304 = vmatmul.mubr.bf16.vlgmr.msra.gmra.mrb[0].mxu0 %v171_v21 }
 0x206   : > { %v305_v22 = vpop.f32.mrb[0].mxu0 }
 0x207   : > { %v311_v23 = vmul.f32 11.313708, %v305_v22  ;;  %v307_v24 = vpop.f32.mrb[1].mxu0 }
 0x208   : > { %v308_v25 = vpop.f32.mrb[2].mxu0 }
 0x209   : > { %312 = vst [vmem:[%s149_s27] sm:$0xff] %v311_v23  ;;  %v309_v26 = vpop.f32.mrb[3].mxu0 }
 0x20a   : > { %533 = shalt.err (!%p530_p7)
}
 0x20b   : > { %s534_s8 = scalar_lea.hbm %s703_s3, 128  ;;  %s538_s17 = scalar_lea.hbm %s747_s2, 256 }
 0x20c   : > { %p535_p8 = scmp.ne.s32.totalorder %s703_s3, %s534_s8  ;;  %p539_p1 = scmp.lt.u32.totalorder %s703_s3, %s747_s2 }
 0x20d   : > { %p540_p0 = scmp.lt.u32.totalorder %s538_s17, %s534_s8  ;;  %p542_p6 = scmp.lt.u32.totalorder %s534_s8, %s703_s3 }
 0x20e   : > { %p536_p11 = pnand %p535_p8, %p758_p9 }
 0x20f   : > { %p541_p5 = por %p540_p0, %p539_p1 }
 0x210   : > { %p537_p13 = pneg %p536_p11 }
 0x211   : > { %p543_p10 = por %p542_p6, %p541_p5 }
 0x213   : > { %p544_p12 = pnand %p543_p10, %p537_p13 }
 0x215   : > { %547 = shalt.err (!%p544_p12)
}
 0x216   : > { %428 = dma.vmem_to_hbm [thread:$0]  (%p758_p9), %s705_s28, 128, %s703_s3, %s314_s4  }
 0x217 PF: > { %p440_p2 = scmp.ge.s32.totalorder %s586_s12, 2  ;;  %s339_s21 = sand.u32 1, %s574_s9  }
 0x218   : > { %p759_p3 = scmp.ne.s32.totalorder %s752_s20, 0  ;;  %s340_s24 = scalar_lea.sflag [#allocation4], %s339_s21 }
 0x21a   : > { %p435_p4 = pnand %p440_p2, %p759_p3 }
 0x21c   : > { %569 = dma.done.wait (!%p435_p4), %s340_s24, 128  }
 0x21d   : > { %571 = vsyncadd (!%p435_p4), %s340_s24, 4294967168  ;;  %p13_p7 = scmp.ge.s32.totalorder %s635_s15, 4   ;;  %s760_s9 = smov %s578_s10 }
 0x21e   : > { %s761_s10 = smov %s582_s11  ;;  %s762_s11 = smov %s646_s18 }
 0x21f   : > { %s763_s12 = smov %s635_s15  ;;  %15 = sbr.rel (!%p13_p7) target bundleno = 4 (0x4), region = 68 }
 0x226   :  { %345 = vsyncpa [#allocation3], 1 }
 0x227   :  { %347 = vsyncpa [#allocation3 + $0x1], 1 }
 0x228   :  { %348 = vsyncpa [#allocation4], 1 }
 0x229   :  { %350 = vsyncpa [#allocation4 + $0x1], 1 }

</bundles_post_ra>
